<compile_context>
chip_gen: v7x
topology: tpu7x:2x2x1
jax: 0.10.0
libtpu: 0.0.40
codegen_flags: <defaults>
</compile_context>

<pallas_src>
import numpy as np
import jax
import jax.numpy as jnp
from jax.experimental import pallas as pl
from jax.experimental.pallas import tpu as pltpu


def _round_up(x, m):
    return (x + m - 1) // m * m


# -----------------------------------------------------------------------------
# Kernel 1: ROI max-pooling.
# Grid = (C-chunks, ROIs) with ROIs sorted by image index so the (b, c) feature
# slab stays resident across consecutive ROIs of the same image.
# -----------------------------------------------------------------------------
def _make_roi_pool_kernel(P):
    def kernel(bidx_ref, bounds_ref, feat_ref, hrow_ref, wcol_ref, out_ref):
        del bidx_ref                         # only used by the index_map
        i = pl.program_id(1)                 # ROI index (sorted order)
        feat = feat_ref[0]                   # (c_tile, HW)  lane-dense slab
        h_idx = hrow_ref[...]                # (1, HW) pixel row index
        w_idx = wcol_ref[...]                # (1, HW) pixel col index
        neg = jnp.array(-jnp.inf, feat.dtype)
        base = i * (4 * P)

        # hoist the pw masks: they do not depend on ph
        w_masks, w_oks = [], []
        for pw in range(P):
            ws = bounds_ref[base + 2 * P + pw]
            we = bounds_ref[base + 3 * P + pw]
            w_masks.append((w_idx >= ws) & (w_idx < we))      # (1, HW)
            w_oks.append(we > ws)

        vals = []
        for ph in range(P):                  # P=4: full unroll is fine
            hs = bounds_ref[base + ph]
            he = bounds_ref[base + P + ph]
            # hoist the h-mask: applied once per ph, reused by all pw bins
            feat_h = jnp.where((h_idx >= hs) & (h_idx < he), feat, neg)
            h_ok = he > hs
            for pw in range(P):
                v = jnp.max(jnp.where(w_masks[pw], feat_h, neg), axis=-1)  # (c_tile,)
                v = jnp.where(jnp.logical_and(h_ok, w_oks[pw]), v,
                              jnp.zeros_like(v))              # empty bin -> 0
                vals.append(v)
        # single dense store per ROI (instead of P*P partial stores)
        out_ref[0] = jnp.stack(vals, axis=0)                  # (P*P, c_tile)
    return kernel


def roi_pool_pallas(features, rois, batch_idx, output_size, spatial_scale):
    """torchvision.ops.roi_pool equivalent. Returns [N, P*P, C] (bin-major)."""
    B, C, H, W = features.shape
    N = rois.shape[0]
    P = output_size
    PP = P * P
    HW = H * W

    # Sort ROIs by image index so consecutive grid steps reuse the resident
    # feature block (identity permutation when boxes arrive as a per-image list).
    order = jnp.argsort(batch_idx)
    inv = jnp.argsort(order)
    rois_s = rois[order]
    bidx_s = batch_idx[order].astype(jnp.int32)

    # --- bin boundary precompute (same quantization as torchvision roi_pool) ---
    start_w = jnp.floor(rois_s[:, 0] * spatial_scale + 0.5).astype(jnp.int32)
    start_h = jnp.floor(rois_s[:, 1] * spatial_scale + 0.5).astype(jnp.int32)
    end_w = jnp.floor(rois_s[:, 2] * spatial_scale + 0.5).astype(jnp.int32)
    end_h = jnp.floor(rois_s[:, 3] * spatial_scale + 0.5).astype(jnp.int32)
    roi_w = jnp.maximum(end_w - start_w + 1, 1).astype(jnp.float32)
    roi_h = jnp.maximum(end_h - start_h + 1, 1).astype(jnp.float32)
    bin_w = roi_w / P
    bin_h = roi_h / P
    pidx = jnp.arange(P, dtype=jnp.float32)
    hstart = jnp.floor(pidx[None, :] * bin_h[:, None]).astype(jnp.int32) + start_h[:, None]
    hend = jnp.ceil((pidx[None, :] + 1.0) * bin_h[:, None]).astype(jnp.int32) + start_h[:, None]
    wstart = jnp.floor(pidx[None, :] * bin_w[:, None]).astype(jnp.int32) + start_w[:, None]
    wend = jnp.ceil((pidx[None, :] + 1.0) * bin_w[:, None]).astype(jnp.int32) + start_w[:, None]
    hstart = jnp.clip(hstart, 0, H)
    hend = jnp.clip(hend, 0, H)
    wstart = jnp.clip(wstart, 0, W)
    wend = jnp.clip(wend, 0, W)
    # one flat 1-D int32 prefetch array: [hs(P), he(P), ws(P), we(P)] per ROI
    bounds = jnp.concatenate([hstart, hend, wstart, wend], axis=1)
    bounds = bounds.reshape(-1).astype(jnp.int32)                 # (N*4*P,)

    feats2d = features.reshape(B, C, HW)     # free for contiguous NCHW
    hrow = jnp.repeat(jnp.arange(H, dtype=jnp.int32), W).reshape(1, HW)
    wcol = jnp.tile(jnp.arange(W, dtype=jnp.int32), H).reshape(1, HW)

    # channel tiling keeps the feature slab small for realistic C (e.g. 256)
    c_tile = 128 if (C % 128 == 0) else C
    Cb = C // c_tile

    grid_spec = pltpu.PrefetchScalarGridSpec(
        num_scalar_prefetch=2,
        grid=(Cb, N),                         # c outer, ROI inner -> block reuse
        in_specs=[
            pl.BlockSpec((1, c_tile, HW), lambda c, i, b, bd: (b[i], c, 0)),
            pl.BlockSpec((1, HW), lambda c, i, b, bd: (0, 0)),
            pl.BlockSpec((1, HW), lambda c, i, b, bd: (0, 0)),
        ],
        out_specs=pl.BlockSpec((1, PP, c_tile), lambda c, i, b, bd: (i, 0, c)),
    )

    pooled_s = pl.pallas_call(
        _make_roi_pool_kernel(P),
        grid_spec=grid_spec,
        out_shape=jax.ShapeDtypeStruct((N, PP, C), features.dtype),
        compiler_params=pltpu.CompilerParams(
            dimension_semantics=("parallel", "parallel")),
    )(bidx_s, bounds, feats2d, hrow, wcol)

    return pooled_s[inv]                      # original ROI order, [N, P*P, C]


# -----------------------------------------------------------------------------
# Kernel 2: bbox head — K-tiled FC + ReLU, fused cls/reg second layer.
# -----------------------------------------------------------------------------
def _bbox_head_kernel(x_ref, w1_ref, b1_ref, w2_ref, b2_ref, out_ref, acc_ref):
    k = pl.program_id(0)

    @pl.when(k == 0)
    def _():
        acc_ref[...] = jnp.zeros_like(acc_ref)

    acc_ref[...] += jnp.dot(x_ref[...], w1_ref[...],
                            preferred_element_type=jnp.float32)

    @pl.when(k == pl.num_programs(0) - 1)
    def _():
        h = jnp.maximum(acc_ref[...] + b1_ref[...], 0.0)
        out_ref[...] = (jnp.dot(h, w2_ref[...], preferred_element_type=jnp.float32)
                        + b2_ref[...]).astype(out_ref.dtype)


def bbox_head_pallas(x, w1, b1, w2, b2):
    """out = relu(x @ w1 + b1) @ w2 + b2, tiled over the D (K) axis."""
    N, D = x.shape
    Hd = w1.shape[1]
    Nout = w2.shape[1]

    tk = min(512, _round_up(D, 128))
    D_pad = _round_up(D, tk)
    N_pad = _round_up(max(N, 8), 8)
    Nout_pad = _round_up(Nout, 128)          # lane-dense fused cls+reg output
    Kt = D_pad // tk

    x_p = jnp.zeros((N_pad, D_pad), x.dtype).at[:N, :D].set(x)
    w1_p = jnp.zeros((D_pad, Hd), w1.dtype).at[:D].set(w1)
    w2_p = jnp.zeros((Hd, Nout_pad), w2.dtype).at[:, :Nout].set(w2)
    b2_p = jnp.zeros((1, Nout_pad), b2.dtype).at[:, :Nout].set(b2)

    grid_spec = pltpu.PrefetchScalarGridSpec(
        num_scalar_prefetch=0,
        grid=(Kt,),
        in_specs=[
            pl.BlockSpec((N_pad, tk), lambda k: (0, k)),       # x K-tile
            pl.BlockSpec((tk, Hd), lambda k: (k, 0)),          # w1 K-tile (pipelined)
            pl.BlockSpec((1, Hd), lambda k: (0, 0)),           # b1 (resident)
            pl.BlockSpec((Hd, Nout_pad), lambda k: (0, 0)),    # fused cls+reg weight
            pl.BlockSpec((1, Nout_pad), lambda k: (0, 0)),     # fused cls+reg bias
        ],
        out_specs=pl.BlockSpec((N_pad, Nout_pad), lambda k: (0, 0)),
        scratch_shapes=[pltpu.VMEM((N_pad, Hd), jnp.float32)],
    )

    out = pl.pallas_call(
        _bbox_head_kernel,
        grid_spec=grid_spec,
        out_shape=jax.ShapeDtypeStruct((N_pad, Nout_pad), jnp.float32),
        compiler_params=pltpu.CompilerParams(
            dimension_semantics=("arbitrary",)),
    )(x_p, w1_p, b1, w2_p, b2_p)
    return out[:N, :Nout]


# -----------------------------------------------------------------------------
# ROIHead wrapper (inference forward path).
# -----------------------------------------------------------------------------
class ROIHeadPallas:
    def __init__(self, roi_output_size, spatial_scale, in_channels, num_classes,
                 hidden, key):
        self.P = roi_output_size
        self.spatial_scale = spatial_scale
        self.num_classes = num_classes
        C, P = in_channels, roi_output_size
        D = C * P * P
        k1, k2, k3, k4, k5, k6 = jax.random.split(key, 6)
        # Canonical (PyTorch-layout) parameters: w1 rows follow
        # torch.flatten(pooled NCHW) order (channel-major).
        self.params = dict(
            w1=jax.random.normal(k1, (D, hidden), jnp.float32) * 0.05,
            b1=jax.random.normal(k2, (1, hidden), jnp.float32) * 0.01,
            wc=jax.random.normal(k3, (hidden, num_classes), jnp.float32) * 0.05,
            bc=jax.random.normal(k4, (1, num_classes), jnp.float32) * 0.01,
            wr=jax.random.normal(k5, (hidden, num_classes * 4), jnp.float32) * 0.05,
            br=jax.random.normal(k6, (1, num_classes * 4), jnp.float32) * 0.01,
        )
        # One-time host-side weight re-layout for the kernels:
        #  * permute w1 rows from (c, ph, pw) flatten order to the kernel's
        #    (ph, pw, c) pooled layout -> no NCHW transpose in the hot path.
        #  * fuse cls/reg weights so the second FC is a single MXU pass.
        j = np.arange(D)
        bin_idx, c_idx = j // C, j % C
        ph, pw = bin_idx // P, bin_idx % P
        perm = c_idx * (P * P) + ph * P + pw
        self._w1k = self.params["w1"][perm]
        self._w2 = jnp.concatenate([self.params["wc"], self.params["wr"]], axis=1)
        self._b2 = jnp.concatenate([self.params["bc"], self.params["br"]], axis=1)

    def __call__(self, features, bboxes):
        # bboxes: list of per-image [n_i, 4] xyxy boxes (like torchvision roi_pool).
        rois = jnp.concatenate(bboxes, axis=0)
        batch_idx = jnp.concatenate(
            [jnp.full((b.shape[0],), i, jnp.int32) for i, b in enumerate(bboxes)])
        pooled = roi_pool_pallas(features, rois, batch_idx, self.P,
                                 self.spatial_scale)          # [N, P*P, C]
        x = pooled.reshape(pooled.shape[0], -1)               # free (bin-major flatten)
        # NOTE: reference ROIHead.forward feeds pooled feats straight to bbox_head;
        # self.mlp is unused there.
        out = bbox_head_pallas(x, self._w1k, self.params["b1"], self._w2, self._b2)
        nc = self.num_classes
        return out[:, :nc], out[:, nc:]


# -----------------------------------------------------------------------------
# Pure numpy reference (PyTorch layout / quantization rules) for a sanity check.
# -----------------------------------------------------------------------------
def _reference(features, rois, batch_idx, P, scale, params):
    feats = np.asarray(features)
    rois = np.asarray(rois)
    bidx = np.asarray(batch_idx)
    B, C, H, W = feats.shape
    N = rois.shape[0]
    pooled = np.zeros((N, C, P, P), np.float32)
    for n in range(N):
        x1, y1, x2, y2 = rois[n]
        sw = int(np.floor(x1 * scale + 0.5)); sh = int(np.floor(y1 * scale + 0.5))
        ew = int(np.floor(x2 * scale + 0.5)); eh = int(np.floor(y2 * scale + 0.5))
        rw = max(ew - sw + 1, 1); rh = max(eh - sh + 1, 1)
        bw = rw / P; bh = rh / P
        for ph in range(P):
            hs = min(max(int(np.floor(ph * bh)) + sh, 0), H)
            he = min(max(int(np.ceil((ph + 1) * bh)) + sh, 0), H)
            for pw in range(P):
                ws = min(max(int(np.floor(pw * bw)) + sw, 0), W)
                we = min(max(int(np.ceil((pw + 1) * bw)) + sw, 0), W)
                if he <= hs or we <= ws:
                    pooled[n, :, ph, pw] = 0.0
                else:
                    pooled[n, :, ph, pw] = feats[bidx[n], :, hs:he, ws:we].max(axis=(1, 2))
    x = pooled.reshape(N, -1)
    h = np.maximum(x @ np.asarray(params["w1"]) + np.asarray(params["b1"]), 0.0)
    cls = h @ np.asarray(params["wc"]) + np.asarray(params["bc"])
    reg = h @ np.asarray(params["wr"]) + np.asarray(params["br"])
    return cls, reg


if __name__ == "__main__":
    key = jax.random.PRNGKey(0)
    kf, kb1, kb2, kp = jax.random.split(key, 4)

    B, C, H, W = 2, 4, 16, 16      # feature map (NCHW)
    P = 4                          # roi_output_size
    spatial_scale = 0.25           # image coords -> feature coords
    num_classes = 5
    hidden = 32
    rois_per_img = 4

    features = jax.random.normal(kf, (B, C, H, W), jnp.float32)

    def make_boxes(k, n):
        k1, k2 = jax.random.split(k)
        xy1 = jax.random.uniform(k1, (n, 2), minval=0.0, maxval=40.0)
        wh = jax.random.uniform(k2, (n, 2), minval=8.0, maxval=24.0)
        xy2 = jnp.minimum(xy1 + wh, 63.0)
        return jnp.concatenate([xy1, xy2], axis=1).astype(jnp.float32)

    bboxes = [make_boxes(kb1, rois_per_img), make_boxes(kb2, rois_per_img)]

    head = ROIHeadPallas(P, spatial_scale, in_channels=C, num_classes=num_classes,
                         hidden=hidden, key=kp)
    class_logits, bbox_regress = head(features, bboxes)
    jax.block_until_ready((class_logits, bbox_regress))

    # sanity check against pure-numpy reference (canonical PyTorch layout)
    rois_all = jnp.concatenate(bboxes, axis=0)
    bidx_all = jnp.concatenate(
        [jnp.full((b.shape[0],), i, jnp.int32) for i, b in enumerate(bboxes)])
    ref_cls, ref_reg = _reference(features, rois_all, bidx_all, P, spatial_scale,
                                  head.params)
    np.testing.assert_allclose(np.asarray(class_logits), ref_cls, atol=1e-4, rtol=1e-4)
    np.testing.assert_allclose(np.asarray(bbox_regress), ref_reg, atol=1e-4, rtol=1e-4)

    print("KERNEL_OK")
</pallas_src>

<mosaic_0001>
module attributes {stable_mosaic.version = 11 : i64} {
  func.func @kernel(%arg0: i32, %arg1: i32, %arg2: memref<8xi32, #tpu.memory_space<smem>>, %arg3: memref<128xi32, #tpu.memory_space<smem>>, %arg4: memref<1x4x256xf32, #tpu.memory_space<vmem>>, %arg5: memref<1x256xi32, #tpu.memory_space<vmem>>, %arg6: memref<1x256xi32, #tpu.memory_space<vmem>>, %arg7: memref<1x16x4xf32, #tpu.memory_space<vmem>>) attributes {dimension_semantics = [#tpu.dimension_semantics<parallel>, #tpu.dimension_semantics<parallel>], iteration_bounds = array<i64: 1, 8>, scalar_prefetch = 2 : i64, scratch_operands = 0 : i64, tpu.core_type = #tpu.core_type<tc>, window_params = [{transform_indices = @transform_0, window_bounds = array<i64: 1, 4, 256>}, {pipeline_mode = #tpu.pipeline_mode<synchronous>, transform_indices = @transform_1, window_bounds = array<i64: 1, 256>}, {pipeline_mode = #tpu.pipeline_mode<synchronous>, transform_indices = @transform_2, window_bounds = array<i64: 1, 256>}, {transform_indices = @transform_3, window_bounds = array<i64: 1, 16, 4>}]} {
    %c0 = arith.constant 0 : index
    %c0_0 = arith.constant 0 : index
    %c0_1 = arith.constant 0 : index
    %0 = vector.load %arg4[%c0, %c0_0, %c0_1] : memref<1x4x256xf32, #tpu.memory_space<vmem>>, vector<1x4x256xf32>
    %1 = vector.shape_cast %0 : vector<1x4x256xf32> to vector<4x256xf32>
    %c0_2 = arith.constant 0 : index
    %c0_3 = arith.constant 0 : index
    %2 = vector.load %arg5[%c0_2, %c0_3] : memref<1x256xi32, #tpu.memory_space<vmem>>, vector<1x256xi32>
    %c0_4 = arith.constant 0 : index
    %c0_5 = arith.constant 0 : index
    %3 = vector.load %arg6[%c0_4, %c0_5] : memref<1x256xi32, #tpu.memory_space<vmem>>, vector<1x256xi32>
    %c16_i32 = arith.constant 16 : i32
    %4 = arith.muli %arg1, %c16_i32 : i32
    %c8_i32 = arith.constant 8 : i32
    %5 = arith.addi %4, %c8_i32 : i32
    %c0_i32 = arith.constant 0 : i32
    %6 = arith.addi %5, %c0_i32 : i32
    %7 = arith.index_cast %6 : i32 to index
    %8 = memref.load %arg3[%7] : memref<128xi32, #tpu.memory_space<smem>>
    %c12_i32 = arith.constant 12 : i32
    %9 = arith.addi %4, %c12_i32 : i32
    %c0_i32_6 = arith.constant 0 : i32
    %10 = arith.addi %9, %c0_i32_6 : i32
    %11 = arith.index_cast %10 : i32 to index
    %12 = memref.load %arg3[%11] : memref<128xi32, #tpu.memory_space<smem>>
    %13 = vector.broadcast %8 : i32 to vector<1x256xi32>
    %14 = arith.cmpi sge, %3, %13 : vector<1x256xi32>
    %15 = vector.broadcast %12 : i32 to vector<1x256xi32>
    %16 = arith.cmpi slt, %3, %15 : vector<1x256xi32>
    %17 = arith.andi %14, %16 : vector<1x256xi1>
    %18 = arith.cmpi sgt, %12, %8 : i32
    %c8_i32_7 = arith.constant 8 : i32
    %19 = arith.addi %4, %c8_i32_7 : i32
    %c1_i32 = arith.constant 1 : i32
    %20 = arith.addi %19, %c1_i32 : i32
    %21 = arith.index_cast %20 : i32 to index
    %22 = memref.load %arg3[%21] : memref<128xi32, #tpu.memory_space<smem>>
    %c12_i32_8 = arith.constant 12 : i32
    %23 = arith.addi %4, %c12_i32_8 : i32
    %c1_i32_9 = arith.constant 1 : i32
    %24 = arith.addi %23, %c1_i32_9 : i32
    %25 = arith.index_cast %24 : i32 to index
    %26 = memref.load %arg3[%25] : memref<128xi32, #tpu.memory_space<smem>>
    %27 = vector.broadcast %22 : i32 to vector<1x256xi32>
    %28 = arith.cmpi sge, %3, %27 : vector<1x256xi32>
    %29 = vector.broadcast %26 : i32 to vector<1x256xi32>
    %30 = arith.cmpi slt, %3, %29 : vector<1x256xi32>
    %31 = arith.andi %28, %30 : vector<1x256xi1>
    %32 = arith.cmpi sgt, %26, %22 : i32
    %c8_i32_10 = arith.constant 8 : i32
    %33 = arith.addi %4, %c8_i32_10 : i32
    %c2_i32 = arith.constant 2 : i32
    %34 = arith.addi %33, %c2_i32 : i32
    %35 = arith.index_cast %34 : i32 to index
    %36 = memref.load %arg3[%35] : memref<128xi32, #tpu.memory_space<smem>>
    %c12_i32_11 = arith.constant 12 : i32
    %37 = arith.addi %4, %c12_i32_11 : i32
    %c2_i32_12 = arith.constant 2 : i32
    %38 = arith.addi %37, %c2_i32_12 : i32
    %39 = arith.index_cast %38 : i32 to index
    %40 = memref.load %arg3[%39] : memref<128xi32, #tpu.memory_space<smem>>
    %41 = vector.broadcast %36 : i32 to vector<1x256xi32>
    %42 = arith.cmpi sge, %3, %41 : vector<1x256xi32>
    %43 = vector.broadcast %40 : i32 to vector<1x256xi32>
    %44 = arith.cmpi slt, %3, %43 : vector<1x256xi32>
    %45 = arith.andi %42, %44 : vector<1x256xi1>
    %46 = arith.cmpi sgt, %40, %36 : i32
    %c8_i32_13 = arith.constant 8 : i32
    %47 = arith.addi %4, %c8_i32_13 : i32
    %c3_i32 = arith.constant 3 : i32
    %48 = arith.addi %47, %c3_i32 : i32
    %49 = arith.index_cast %48 : i32 to index
    %50 = memref.load %arg3[%49] : memref<128xi32, #tpu.memory_space<smem>>
    %c12_i32_14 = arith.constant 12 : i32
    %51 = arith.addi %4, %c12_i32_14 : i32
    %c3_i32_15 = arith.constant 3 : i32
    %52 = arith.addi %51, %c3_i32_15 : i32
    %53 = arith.index_cast %52 : i32 to index
    %54 = memref.load %arg3[%53] : memref<128xi32, #tpu.memory_space<smem>>
    %55 = vector.broadcast %50 : i32 to vector<1x256xi32>
    %56 = arith.cmpi sge, %3, %55 : vector<1x256xi32>
    %57 = vector.broadcast %54 : i32 to vector<1x256xi32>
    %58 = arith.cmpi slt, %3, %57 : vector<1x256xi32>
    %59 = arith.andi %56, %58 : vector<1x256xi1>
    %60 = arith.cmpi sgt, %54, %50 : i32
    %c0_i32_16 = arith.constant 0 : i32
    %61 = arith.addi %4, %c0_i32_16 : i32
    %62 = arith.index_cast %61 : i32 to index
    %63 = memref.load %arg3[%62] : memref<128xi32, #tpu.memory_space<smem>>
    %c4_i32 = arith.constant 4 : i32
    %64 = arith.addi %4, %c4_i32 : i32
    %c0_i32_17 = arith.constant 0 : i32
    %65 = arith.addi %64, %c0_i32_17 : i32
    %66 = arith.index_cast %65 : i32 to index
    %67 = memref.load %arg3[%66] : memref<128xi32, #tpu.memory_space<smem>>
    %68 = vector.broadcast %63 : i32 to vector<1x256xi32>
    %69 = arith.cmpi sge, %2, %68 : vector<1x256xi32>
    %70 = vector.broadcast %67 : i32 to vector<1x256xi32>
    %71 = arith.cmpi slt, %2, %70 : vector<1x256xi32>
    %72 = arith.andi %69, %71 : vector<1x256xi1>
    %cst = arith.constant 0xFF800000 : f32
    %73 = vector.shape_cast %72 : vector<1x256xi1> to vector<1x256xi1>
    %74 = vector.broadcast %73 : vector<1x256xi1> to vector<4x256xi1>
    %75 = vector.broadcast %cst : f32 to vector<4x256xf32>
    %76 = arith.select %74, %1, %75 : vector<4x256xi1>, vector<4x256xf32>
    %77 = arith.cmpi sgt, %67, %63 : i32
    %cst_18 = arith.constant 0xFF800000 : f32
    %78 = vector.shape_cast %17 : vector<1x256xi1> to vector<1x256xi1>
    %79 = vector.broadcast %78 : vector<1x256xi1> to vector<4x256xi1>
    %80 = vector.broadcast %cst_18 : f32 to vector<4x256xf32>
    %81 = arith.select %79, %76, %80 : vector<4x256xi1>, vector<4x256xf32>
    %cst_19 = arith.constant dense<0xFF800000> : vector<4xf32>
    %82 = vector.multi_reduction <maximumf>, %81, %cst_19 [1] : vector<4x256xf32> to vector<4xf32>
    %83 = arith.andi %77, %18 : i1
    %cst_20 = arith.constant 0.000000e+00 : f32
    %84 = vector.broadcast %cst_20 : f32 to vector<4xf32>
    %85 = arith.select %83, %82, %84 : vector<4xf32>
    %cst_21 = arith.constant 0xFF800000 : f32
    %86 = vector.shape_cast %31 : vector<1x256xi1> to vector<1x256xi1>
    %87 = vector.broadcast %86 : vector<1x256xi1> to vector<4x256xi1>
    %88 = vector.broadcast %cst_21 : f32 to vector<4x256xf32>
    %89 = arith.select %87, %76, %88 : vector<4x256xi1>, vector<4x256xf32>
    %cst_22 = arith.constant dense<0xFF800000> : vector<4xf32>
    %90 = vector.multi_reduction <maximumf>, %89, %cst_22 [1] : vector<4x256xf32> to vector<4xf32>
    %91 = arith.andi %77, %32 : i1
    %cst_23 = arith.constant 0.000000e+00 : f32
    %92 = vector.broadcast %cst_23 : f32 to vector<4xf32>
    %93 = arith.select %91, %90, %92 : vector<4xf32>
    %cst_24 = arith.constant 0xFF800000 : f32
    %94 = vector.shape_cast %45 : vector<1x256xi1> to vector<1x256xi1>
    %95 = vector.broadcast %94 : vector<1x256xi1> to vector<4x256xi1>
    %96 = vector.broadcast %cst_24 : f32 to vector<4x256xf32>
    %97 = arith.select %95, %76, %96 : vector<4x256xi1>, vector<4x256xf32>
    %cst_25 = arith.constant dense<0xFF800000> : vector<4xf32>
    %98 = vector.multi_reduction <maximumf>, %97, %cst_25 [1] : vector<4x256xf32> to vector<4xf32>
    %99 = arith.andi %77, %46 : i1
    %cst_26 = arith.constant 0.000000e+00 : f32
    %100 = vector.broadcast %cst_26 : f32 to vector<4xf32>
    %101 = arith.select %99, %98, %100 : vector<4xf32>
    %cst_27 = arith.constant 0xFF800000 : f32
    %102 = vector.shape_cast %59 : vector<1x256xi1> to vector<1x256xi1>
    %103 = vector.broadcast %102 : vector<1x256xi1> to vector<4x256xi1>
    %104 = vector.broadcast %cst_27 : f32 to vector<4x256xf32>
    %105 = arith.select %103, %76, %104 : vector<4x256xi1>, vector<4x256xf32>
    %cst_28 = arith.constant dense<0xFF800000> : vector<4xf32>
    %106 = vector.multi_reduction <maximumf>, %105, %cst_28 [1] : vector<4x256xf32> to vector<4xf32>
    %107 = arith.andi %77, %60 : i1
    %cst_29 = arith.constant 0.000000e+00 : f32
    %108 = vector.broadcast %cst_29 : f32 to vector<4xf32>
    %109 = arith.select %107, %106, %108 : vector<4xf32>
    %c1_i32_30 = arith.constant 1 : i32
    %110 = arith.addi %4, %c1_i32_30 : i32
    %111 = arith.index_cast %110 : i32 to index
    %112 = memref.load %arg3[%111] : memref<128xi32, #tpu.memory_space<smem>>
    %c4_i32_31 = arith.constant 4 : i32
    %113 = arith.addi %4, %c4_i32_31 : i32
    %c1_i32_32 = arith.constant 1 : i32
    %114 = arith.addi %113, %c1_i32_32 : i32
    %115 = arith.index_cast %114 : i32 to index
    %116 = memref.load %arg3[%115] : memref<128xi32, #tpu.memory_space<smem>>
    %117 = vector.broadcast %112 : i32 to vector<1x256xi32>
    %118 = arith.cmpi sge, %2, %117 : vector<1x256xi32>
    %119 = vector.broadcast %116 : i32 to vector<1x256xi32>
    %120 = arith.cmpi slt, %2, %119 : vector<1x256xi32>
    %121 = arith.andi %118, %120 : vector<1x256xi1>
    %cst_33 = arith.constant 0xFF800000 : f32
    %122 = vector.shape_cast %121 : vector<1x256xi1> to vector<1x256xi1>
    %123 = vector.broadcast %122 : vector<1x256xi1> to vector<4x256xi1>
    %124 = vector.broadcast %cst_33 : f32 to vector<4x256xf32>
    %125 = arith.select %123, %1, %124 : vector<4x256xi1>, vector<4x256xf32>
    %126 = arith.cmpi sgt, %116, %112 : i32
    %cst_34 = arith.constant 0xFF800000 : f32
    %127 = vector.shape_cast %17 : vector<1x256xi1> to vector<1x256xi1>
    %128 = vector.broadcast %127 : vector<1x256xi1> to vector<4x256xi1>
    %129 = vector.broadcast %cst_34 : f32 to vector<4x256xf32>
    %130 = arith.select %128, %125, %129 : vector<4x256xi1>, vector<4x256xf32>
    %cst_35 = arith.constant dense<0xFF800000> : vector<4xf32>
    %131 = vector.multi_reduction <maximumf>, %130, %cst_35 [1] : vector<4x256xf32> to vector<4xf32>
    %132 = arith.andi %126, %18 : i1
    %cst_36 = arith.constant 0.000000e+00 : f32
    %133 = vector.broadcast %cst_36 : f32 to vector<4xf32>
    %134 = arith.select %132, %131, %133 : vector<4xf32>
    %cst_37 = arith.constant 0xFF800000 : f32
    %135 = vector.shape_cast %31 : vector<1x256xi1> to vector<1x256xi1>
    %136 = vector.broadcast %135 : vector<1x256xi1> to vector<4x256xi1>
    %137 = vector.broadcast %cst_37 : f32 to vector<4x256xf32>
    %138 = arith.select %136, %125, %137 : vector<4x256xi1>, vector<4x256xf32>
    %cst_38 = arith.constant dense<0xFF800000> : vector<4xf32>
    %139 = vector.multi_reduction <maximumf>, %138, %cst_38 [1] : vector<4x256xf32> to vector<4xf32>
    %140 = arith.andi %126, %32 : i1
    %cst_39 = arith.constant 0.000000e+00 : f32
    %141 = vector.broadcast %cst_39 : f32 to vector<4xf32>
    %142 = arith.select %140, %139, %141 : vector<4xf32>
    %cst_40 = arith.constant 0xFF800000 : f32
    %143 = vector.shape_cast %45 : vector<1x256xi1> to vector<1x256xi1>
    %144 = vector.broadcast %143 : vector<1x256xi1> to vector<4x256xi1>
    %145 = vector.broadcast %cst_40 : f32 to vector<4x256xf32>
    %146 = arith.select %144, %125, %145 : vector<4x256xi1>, vector<4x256xf32>
    %cst_41 = arith.constant dense<0xFF800000> : vector<4xf32>
    %147 = vector.multi_reduction <maximumf>, %146, %cst_41 [1] : vector<4x256xf32> to vector<4xf32>
    %148 = arith.andi %126, %46 : i1
    %cst_42 = arith.constant 0.000000e+00 : f32
    %149 = vector.broadcast %cst_42 : f32 to vector<4xf32>
    %150 = arith.select %148, %147, %149 : vector<4xf32>
    %cst_43 = arith.constant 0xFF800000 : f32
    %151 = vector.shape_cast %59 : vector<1x256xi1> to vector<1x256xi1>
    %152 = vector.broadcast %151 : vector<1x256xi1> to vector<4x256xi1>
    %153 = vector.broadcast %cst_43 : f32 to vector<4x256xf32>
    %154 = arith.select %152, %125, %153 : vector<4x256xi1>, vector<4x256xf32>
    %cst_44 = arith.constant dense<0xFF800000> : vector<4xf32>
    %155 = vector.multi_reduction <maximumf>, %154, %cst_44 [1] : vector<4x256xf32> to vector<4xf32>
    %156 = arith.andi %126, %60 : i1
    %cst_45 = arith.constant 0.000000e+00 : f32
    %157 = vector.broadcast %cst_45 : f32 to vector<4xf32>
    %158 = arith.select %156, %155, %157 : vector<4xf32>
    %c2_i32_46 = arith.constant 2 : i32
    %159 = arith.addi %4, %c2_i32_46 : i32
    %160 = arith.index_cast %159 : i32 to index
    %161 = memref.load %arg3[%160] : memref<128xi32, #tpu.memory_space<smem>>
    %c4_i32_47 = arith.constant 4 : i32
    %162 = arith.addi %4, %c4_i32_47 : i32
    %c2_i32_48 = arith.constant 2 : i32
    %163 = arith.addi %162, %c2_i32_48 : i32
    %164 = arith.index_cast %163 : i32 to index
    %165 = memref.load %arg3[%164] : memref<128xi32, #tpu.memory_space<smem>>
    %166 = vector.broadcast %161 : i32 to vector<1x256xi32>
    %167 = arith.cmpi sge, %2, %166 : vector<1x256xi32>
    %168 = vector.broadcast %165 : i32 to vector<1x256xi32>
    %169 = arith.cmpi slt, %2, %168 : vector<1x256xi32>
    %170 = arith.andi %167, %169 : vector<1x256xi1>
    %cst_49 = arith.constant 0xFF800000 : f32
    %171 = vector.shape_cast %170 : vector<1x256xi1> to vector<1x256xi1>
    %172 = vector.broadcast %171 : vector<1x256xi1> to vector<4x256xi1>
    %173 = vector.broadcast %cst_49 : f32 to vector<4x256xf32>
    %174 = arith.select %172, %1, %173 : vector<4x256xi1>, vector<4x256xf32>
    %175 = arith.cmpi sgt, %165, %161 : i32
    %cst_50 = arith.constant 0xFF800000 : f32
    %176 = vector.shape_cast %17 : vector<1x256xi1> to vector<1x256xi1>
    %177 = vector.broadcast %176 : vector<1x256xi1> to vector<4x256xi1>
    %178 = vector.broadcast %cst_50 : f32 to vector<4x256xf32>
    %179 = arith.select %177, %174, %178 : vector<4x256xi1>, vector<4x256xf32>
    %cst_51 = arith.constant dense<0xFF800000> : vector<4xf32>
    %180 = vector.multi_reduction <maximumf>, %179, %cst_51 [1] : vector<4x256xf32> to vector<4xf32>
    %181 = arith.andi %175, %18 : i1
    %cst_52 = arith.constant 0.000000e+00 : f32
    %182 = vector.broadcast %cst_52 : f32 to vector<4xf32>
    %183 = arith.select %181, %180, %182 : vector<4xf32>
    %cst_53 = arith.constant 0xFF800000 : f32
    %184 = vector.shape_cast %31 : vector<1x256xi1> to vector<1x256xi1>
    %185 = vector.broadcast %184 : vector<1x256xi1> to vector<4x256xi1>
    %186 = vector.broadcast %cst_53 : f32 to vector<4x256xf32>
    %187 = arith.select %185, %174, %186 : vector<4x256xi1>, vector<4x256xf32>
    %cst_54 = arith.constant dense<0xFF800000> : vector<4xf32>
    %188 = vector.multi_reduction <maximumf>, %187, %cst_54 [1] : vector<4x256xf32> to vector<4xf32>
    %189 = arith.andi %175, %32 : i1
    %cst_55 = arith.constant 0.000000e+00 : f32
    %190 = vector.broadcast %cst_55 : f32 to vector<4xf32>
    %191 = arith.select %189, %188, %190 : vector<4xf32>
    %cst_56 = arith.constant 0xFF800000 : f32
    %192 = vector.shape_cast %45 : vector<1x256xi1> to vector<1x256xi1>
    %193 = vector.broadcast %192 : vector<1x256xi1> to vector<4x256xi1>
    %194 = vector.broadcast %cst_56 : f32 to vector<4x256xf32>
    %195 = arith.select %193, %174, %194 : vector<4x256xi1>, vector<4x256xf32>
    %cst_57 = arith.constant dense<0xFF800000> : vector<4xf32>
    %196 = vector.multi_reduction <maximumf>, %195, %cst_57 [1] : vector<4x256xf32> to vector<4xf32>
    %197 = arith.andi %175, %46 : i1
    %cst_58 = arith.constant 0.000000e+00 : f32
    %198 = vector.broadcast %cst_58 : f32 to vector<4xf32>
    %199 = arith.select %197, %196, %198 : vector<4xf32>
    %cst_59 = arith.constant 0xFF800000 : f32
    %200 = vector.shape_cast %59 : vector<1x256xi1> to vector<1x256xi1>
    %201 = vector.broadcast %200 : vector<1x256xi1> to vector<4x256xi1>
    %202 = vector.broadcast %cst_59 : f32 to vector<4x256xf32>
    %203 = arith.select %201, %174, %202 : vector<4x256xi1>, vector<4x256xf32>
    %cst_60 = arith.constant dense<0xFF800000> : vector<4xf32>
    %204 = vector.multi_reduction <maximumf>, %203, %cst_60 [1] : vector<4x256xf32> to vector<4xf32>
    %205 = arith.andi %175, %60 : i1
    %cst_61 = arith.constant 0.000000e+00 : f32
    %206 = vector.broadcast %cst_61 : f32 to vector<4xf32>
    %207 = arith.select %205, %204, %206 : vector<4xf32>
    %c3_i32_62 = arith.constant 3 : i32
    %208 = arith.addi %4, %c3_i32_62 : i32
    %209 = arith.index_cast %208 : i32 to index
    %210 = memref.load %arg3[%209] : memref<128xi32, #tpu.memory_space<smem>>
    %c4_i32_63 = arith.constant 4 : i32
    %211 = arith.addi %4, %c4_i32_63 : i32
    %c3_i32_64 = arith.constant 3 : i32
    %212 = arith.addi %211, %c3_i32_64 : i32
    %213 = arith.index_cast %212 : i32 to index
    %214 = memref.load %arg3[%213] : memref<128xi32, #tpu.memory_space<smem>>
    %215 = vector.broadcast %210 : i32 to vector<1x256xi32>
    %216 = arith.cmpi sge, %2, %215 : vector<1x256xi32>
    %217 = vector.broadcast %214 : i32 to vector<1x256xi32>
    %218 = arith.cmpi slt, %2, %217 : vector<1x256xi32>
    %219 = arith.andi %216, %218 : vector<1x256xi1>
    %cst_65 = arith.constant 0xFF800000 : f32
    %220 = vector.shape_cast %219 : vector<1x256xi1> to vector<1x256xi1>
    %221 = vector.broadcast %220 : vector<1x256xi1> to vector<4x256xi1>
    %222 = vector.broadcast %cst_65 : f32 to vector<4x256xf32>
    %223 = arith.select %221, %1, %222 : vector<4x256xi1>, vector<4x256xf32>
    %224 = arith.cmpi sgt, %214, %210 : i32
    %cst_66 = arith.constant 0xFF800000 : f32
    %225 = vector.shape_cast %17 : vector<1x256xi1> to vector<1x256xi1>
    %226 = vector.broadcast %225 : vector<1x256xi1> to vector<4x256xi1>
    %227 = vector.broadcast %cst_66 : f32 to vector<4x256xf32>
    %228 = arith.select %226, %223, %227 : vector<4x256xi1>, vector<4x256xf32>
    %cst_67 = arith.constant dense<0xFF800000> : vector<4xf32>
    %229 = vector.multi_reduction <maximumf>, %228, %cst_67 [1] : vector<4x256xf32> to vector<4xf32>
    %230 = arith.andi %224, %18 : i1
    %cst_68 = arith.constant 0.000000e+00 : f32
    %231 = vector.broadcast %cst_68 : f32 to vector<4xf32>
    %232 = arith.select %230, %229, %231 : vector<4xf32>
    %cst_69 = arith.constant 0xFF800000 : f32
    %233 = vector.shape_cast %31 : vector<1x256xi1> to vector<1x256xi1>
    %234 = vector.broadcast %233 : vector<1x256xi1> to vector<4x256xi1>
    %235 = vector.broadcast %cst_69 : f32 to vector<4x256xf32>
    %236 = arith.select %234, %223, %235 : vector<4x256xi1>, vector<4x256xf32>
    %cst_70 = arith.constant dense<0xFF800000> : vector<4xf32>
    %237 = vector.multi_reduction <maximumf>, %236, %cst_70 [1] : vector<4x256xf32> to vector<4xf32>
    %238 = arith.andi %224, %32 : i1
    %cst_71 = arith.constant 0.000000e+00 : f32
    %239 = vector.broadcast %cst_71 : f32 to vector<4xf32>
    %240 = arith.select %238, %237, %239 : vector<4xf32>
    %cst_72 = arith.constant 0xFF800000 : f32
    %241 = vector.shape_cast %45 : vector<1x256xi1> to vector<1x256xi1>
    %242 = vector.broadcast %241 : vector<1x256xi1> to vector<4x256xi1>
    %243 = vector.broadcast %cst_72 : f32 to vector<4x256xf32>
    %244 = arith.select %242, %223, %243 : vector<4x256xi1>, vector<4x256xf32>
    %cst_73 = arith.constant dense<0xFF800000> : vector<4xf32>
    %245 = vector.multi_reduction <maximumf>, %244, %cst_73 [1] : vector<4x256xf32> to vector<4xf32>
    %246 = arith.andi %224, %46 : i1
    %cst_74 = arith.constant 0.000000e+00 : f32
    %247 = vector.broadcast %cst_74 : f32 to vector<4xf32>
    %248 = arith.select %246, %245, %247 : vector<4xf32>
    %cst_75 = arith.constant 0xFF800000 : f32
    %249 = vector.shape_cast %59 : vector<1x256xi1> to vector<1x256xi1>
    %250 = vector.broadcast %249 : vector<1x256xi1> to vector<4x256xi1>
    %251 = vector.broadcast %cst_75 : f32 to vector<4x256xf32>
    %252 = arith.select %250, %223, %251 : vector<4x256xi1>, vector<4x256xf32>
    %cst_76 = arith.constant dense<0xFF800000> : vector<4xf32>
    %253 = vector.multi_reduction <maximumf>, %252, %cst_76 [1] : vector<4x256xf32> to vector<4xf32>
    %254 = arith.andi %224, %60 : i1
    %cst_77 = arith.constant 0.000000e+00 : f32
    %255 = vector.broadcast %cst_77 : f32 to vector<4xf32>
    %256 = arith.select %254, %253, %255 : vector<4xf32>
    %257 = vector.shape_cast %85 : vector<4xf32> to vector<1x4xf32>
    %258 = vector.shape_cast %93 : vector<4xf32> to vector<1x4xf32>
    %259 = vector.shape_cast %101 : vector<4xf32> to vector<1x4xf32>
    %260 = vector.shape_cast %109 : vector<4xf32> to vector<1x4xf32>
    %261 = vector.shape_cast %134 : vector<4xf32> to vector<1x4xf32>
    %262 = vector.shape_cast %142 : vector<4xf32> to vector<1x4xf32>
    %263 = vector.shape_cast %150 : vector<4xf32> to vector<1x4xf32>
    %264 = vector.shape_cast %158 : vector<4xf32> to vector<1x4xf32>
    %265 = vector.shape_cast %183 : vector<4xf32> to vector<1x4xf32>
    %266 = vector.shape_cast %191 : vector<4xf32> to vector<1x4xf32>
    %267 = vector.shape_cast %199 : vector<4xf32> to vector<1x4xf32>
    %268 = vector.shape_cast %207 : vector<4xf32> to vector<1x4xf32>
    %269 = vector.shape_cast %232 : vector<4xf32> to vector<1x4xf32>
    %270 = vector.shape_cast %240 : vector<4xf32> to vector<1x4xf32>
    %271 = vector.shape_cast %248 : vector<4xf32> to vector<1x4xf32>
    %272 = vector.shape_cast %256 : vector<4xf32> to vector<1x4xf32>
    %273 = tpu.concatenate %257, %258, %259, %260, %261, %262, %263, %264, %265, %266, %267, %268, %269, %270, %271, %272 in 0 : vector<1x4xf32>, vector<1x4xf32>, vector<1x4xf32>, vector<1x4xf32>, vector<1x4xf32>, vector<1x4xf32>, vector<1x4xf32>, vector<1x4xf32>, vector<1x4xf32>, vector<1x4xf32>, vector<1x4xf32>, vector<1x4xf32>, vector<1x4xf32>, vector<1x4xf32>, vector<1x4xf32>, vector<1x4xf32> -> vector<16x4xf32>
    %c0_78 = arith.constant 0 : index
    %c0_79 = arith.constant 0 : index
    %c0_80 = arith.constant 0 : index
    %274 = vector.load %arg7[%c0_78, %c0_79, %c0_80] : memref<1x16x4xf32, #tpu.memory_space<vmem>>, vector<1x16x4xf32>
    %275 = vector.shape_cast %274 : vector<1x16x4xf32> to vector<16x4xf32>
    %276 = vector.shape_cast %273 : vector<16x4xf32> to vector<1x16x4xf32>
    tpu.vector_store %arg7[%c0_78, %c0_79, %c0_80], %276 {strides = array<i32>} : memref<1x16x4xf32, #tpu.memory_space<vmem>>, vector<1x16x4xf32>,
    return
  }
  func.func @transform_0(%arg0: i32, %arg1: i32, %arg2: memref<8xi32, #tpu.memory_space<smem>>, %arg3: memref<128xi32, #tpu.memory_space<smem>>) -> (i32, i32, i32) {
    %0 = arith.index_cast %arg1 : i32 to index
    %1 = memref.load %arg2[%0] : memref<8xi32, #tpu.memory_space<smem>>
    %c0_i32 = arith.constant 0 : i32
    %c0_i32_0 = arith.constant 0 : i32
    return %1, %arg0, %c0_i32 : i32, i32, i32
  }
  func.func @transform_1(%arg0: i32, %arg1: i32, %arg2: memref<8xi32, #tpu.memory_space<smem>>, %arg3: memref<128xi32, #tpu.memory_space<smem>>) -> (i32, i32) {
    %c0_i32 = arith.constant 0 : i32
    %c0_i32_0 = arith.constant 0 : i32
    %c0_i32_1 = arith.constant 0 : i32
    return %c0_i32, %c0_i32_0 : i32, i32
  }
  func.func @transform_2(%arg0: i32, %arg1: i32, %arg2: memref<8xi32, #tpu.memory_space<smem>>, %arg3: memref<128xi32, #tpu.memory_space<smem>>) -> (i32, i32) {
    %c0_i32 = arith.constant 0 : i32
    %c0_i32_0 = arith.constant 0 : i32
    %c0_i32_1 = arith.constant 0 : i32
    return %c0_i32, %c0_i32_0 : i32, i32
  }
  func.func @transform_3(%arg0: i32, %arg1: i32, %arg2: memref<8xi32, #tpu.memory_space<smem>>, %arg3: memref<128xi32, #tpu.memory_space<smem>>) -> (i32, i32, i32) {
    %c0_i32 = arith.constant 0 : i32
    %c0_i32_0 = arith.constant 0 : i32
    return %arg1, %c0_i32, %arg0 : i32, i32, i32
  }
}

</mosaic_0001>

<bundles_post_ra>
// kernel: tpu_custom_call.1
= control target key start
LH: loop header
LB: loop body
LE: loop exit
PB: predicated region body
PF: predicated region fallthrough
CT: control target
= control target key end

     0   :  { %s1752_s0 = inlined_call_operand.hbm [shape: s32[8], index: 0, kind: input, shape index: {}]   ;;  %s1753_s2 = inlined_call_operand.hbm [shape: f32[2,4,256], index: 2, kind: input, shape index: {}]   ;;  %s1754_s3 = inlined_call_operand.vmem [shape: s32[1,256], index: 3, kind: input, shape index: {}]   ;;  %s1755_s4 = inlined_call_operand.vmem [shape: s32[1,256], index: 4, kind: input, shape index: {}]   ;;  %s1756_s5 = inlined_call_operand.vmem [shape: f32[8,16,4], index: 5, kind: output, shape index: {}]   ;;  %s1757_s1 = inlined_call_operand.vmem [shape: s32[128], index: 1, kind: input, shape index: {}]  }
   0x1   :  { %1763 = sst [smem:[#allocation12_spill]] %s1753_s2  ;;  %s926_s20 = scalar_lea.hbm %s1752_s0, 16 }
   0x2   :  { %1764 = sst [smem:[#allocation13_spill]] %s1754_s3  ;;  %p927_p0 = scmp.ne.s32.totalorder %s1752_s0, %s926_s20 }
   0x3   :  { %1765 = sst [smem:[#allocation14_spill]] %s1755_s4  ;;  %p930_p1 = scmp.lt.u32.totalorder %s926_s20, %s1752_s0 }
   0x5   :  { %p932_p2 = pnand %p930_p1, %p927_p0 }
   0x7   :  { %935 = shalt.err (!%p932_p2)  }
   0x8   :  { %s1032_s25 = smov [#allocation3]   ;;  %s12_s30 = sshll.u32 %s1757_s1, 4  ;;  %s13_s30 = int_to_ptr.vmem [resolvable:$true] %s12_s30 }
   0x9   :  { %11 = dma.hbm_to_smem %s1752_s0, 16, %s1032_s25, [#allocation2] }
   0xa   :  { %s936_s6 = scalar_lea.vmem %s13_s30, 16  ;;  %p941_p4 = scmp.lt.s32.totalorder %s13_s30, %s13_s30 }
   0xb   :  { %p937_p3 = scmp.ne.s32.totalorder %s13_s30, %s936_s6  ;;  %p942_p5 = scmp.lt.s32.totalorder %s936_s6, %s936_s6 }
   0xd   :  { %p943_p6 = por %p942_p5, %p941_p4 }
   0xf   :  { %p944_p7 = pnand %p943_p6, %p937_p3 }
  0x11   :  { %947 = shalt.err (!%p944_p7)  }
  0x12   :  { %s1033_s7 = smov [#allocation4]  }
  0x13   :  { %15 = dma.vmem_to_smem %s13_s30, 16, %s1033_s7, [#allocation2] }
  0x14   :  { %1002 = dma.done.wait [#allocation2], 32 }
  0x15   :  { %1003 = vsyncadd [#allocation2], 4294967264 }
  0x16   :  { %17 = sfence }
  0x17   :  { %18 = vsyncpa [#allocation6], 0 }
  0x18   :  { %20 = vsyncpa [#allocation6 + $0x1], 0  ;;  %s1081_s0 = smov 0   ;;  %s1083_s8 = smov 0  }
  0x19   :  { %s1085_s1 = smov 0   ;;  %s1087_s9 = smov 0  }
  0x1a   :  { %s1089_s10 = smov 0   ;;  %s1091_s11 = smov 0  }
  0x1b LB: > { %s35_s12 = sadd.s32 1, %s1026_s10  ;;  %s831_s13 = sadd.s32 4294967295, %s1030_s11   ;;  %s1030_s11 = sphi %s1091_s11, %s26_s11   ;;  %s1026_s10 = sphi %s1089_s10, %s1841_s10   ;;  %s1022_s9 = sphi %s1087_s9, %s1840_s9   ;;  %s1018_s1 = sphi %s1085_s1, %s1839_s1   ;;  %s1014_s8 = sphi %s1083_s8, %s1838_s8   ;;  %s1010_s0 = sphi %s1081_s0, %s1837_s0  }
  0x1c   : > { %p36_p8 = scmp.ge.s32.totalorder %s35_s12, 8  ;;  %s42_s14 = sld [smem:[#allocation3 + %s1026_s10]] }
  0x1d   : > { %p56_p9 = scmp.ne.s32.totalorder %s1018_s1, %s1014_s8  ;;  %p57_p10 = scmp.eq.s32.totalorder %s1030_s11, 0 }
  0x1e   : > { %s1843_s12 = smov (%p36_p8, %s35_s12), 0  ;;  %p62_p11 = scmp.ne.s32.totalorder %s1014_s8, %s1010_s0 }
  0x1f   : > { %1766 = sst [smem:[#allocation11_spill]] %s1843_s12  ;;  %p63_p12 = scmp.eq.s32.totalorder %s831_s13, 0 }
  0x20   : > { %s43_s15 = sld [smem:[#allocation3 + %s1843_s12]]  ;;  %s49_s17 = sadd.s32 1, %s1018_s1 }
  0x21   : > { %p1119_p13 = por %p63_p12, %p62_p11  ;;  %s162_s18 = sand.u32 1, %s1018_s1  }
  0x22   : > { %p58_p0 = por %p57_p10, %p56_p9  ;;  %s835_s19 = sshll.u32 %s162_s18, 3 }
  0x23   : > { %s1767_s16 = scalar_select %p1119_p13, 1, 0 }
  0x24   : > { %p873_p1 = scmp.lt.s32.totalorder %s1030_s11, 8  ;;  %p838_p2 = scmp.ge.s32.totalorder %s1030_s11, 1 }
  0x25   : > { %s863_s22 = scalar_select %p58_p0, [#allocation3], [#allocation7] }
  0x26   : > { %s44_s20 = ssub.s32 %s42_s14, %s43_s15  ;;  %p1127_p4 = pnand %p873_p1, %p58_p0 }
  0x27   : > { %p47_p3 = scmp.eq.s32.totalorder %s44_s20, 0  ;;  %s1845_s22 = smov (!%p873_p1, %s863_s22), [#allocation8] }
  0x28   : > { %s864_s24 = scalar_select %p58_p0, %s1026_s10, 0 }
  0x29   : > { %s1132_s23 = scalar_select %p47_p3, %s1018_s1, %s49_s17  }
  0x2a   : > { %s1847_s24 = smov (!%p873_p1, %s864_s24), 0  ;;  %p182_p5 = scmp.lt.s32.totalorder %s1030_s11, 9 }
  0x2b   : > { %s167_s25 = sld [smem:[%s1845_s22 + %s1847_s24]]  ;;  %s166_s27 = scalar_lea.vmem [#allocation5], %s835_s19 }
  0x2c   : > { %p1136_p6 = pnand %p838_p2, %p182_p5  ;;  %s177_s28 = sshll.u32 %s166_s27, 4  ;;  %s1140_s28 = int_to_ptr.vmem [resolvable:$true] %s177_s28 }
  0x2d   : > { %s1770_s2 = sld [smem:[#allocation12_spill]]  ;;  %s163_s0 = scalar_lea.sflag [#allocation6], %s162_s18 }
  0x2e   : > { %p950_p8 = pneg %p1127_p4 }
  0x31   : > { %s861_s29 = sshll.u32 %s167_s25, 7 }
  0x33   : > { %s1145_s7 = scalar_lea.hbm %s1770_s2, %s861_s29  ;;  %s953_s17 = scalar_lea.hbm %s1770_s2, 256 }
  0x34   : > { %s948_s13 = scalar_lea.hbm %s1145_s7, 128  ;;  %p954_p11 = scmp.lt.u32.totalorder %s1145_s7, %s1770_s2 }
  0x35   : > { %p949_p7 = scmp.ne.s32.totalorder %s1145_s7, %s948_s13  ;;  %p955_p12 = scmp.lt.u32.totalorder %s953_s17, %s948_s13 }
  0x36   : > { %p957_p1 = scmp.lt.u32.totalorder %s948_s13, %s1145_s7 }
  0x37   : > { %p951_p9 = pnand %p950_p8, %p949_p7  ;;  %p956_p0 = por %p955_p12, %p954_p11 }
  0x39   : > { %p952_p10 = pneg %p951_p9  ;;  %p958_p2 = por %p957_p1, %p956_p0 }
  0x3b   : > { %p959_p3 = pnand %p958_p2, %p952_p10 }
  0x3d   : > { %962 = shalt.err (!%p959_p3)
}
  0x3e   : > { %s963_s18 = scalar_lea.vmem %s1140_s28, 128  ;;  %s1034_s22 = smov [#allocation5]  }
  0x3f   : > { %p964_p5 = scmp.ne.s32.totalorder %s1140_s28, %s963_s18  ;;  %s968_s24 = sshll.u32 %s1034_s22, 4  ;;  %s969_s24 = int_to_ptr.vmem [resolvable:$false] %s968_s24 }
  0x40   : > { %s970_s25 = scalar_lea.vmem %s969_s24, 256  ;;  %p971_p13 = scmp.lt.s32.totalorder %s1140_s28, %s969_s24 }
  0x41   : > { %p966_p7 = pnand %p964_p5, %p950_p8  ;;  %p972_p11 = scmp.lt.s32.totalorder %s970_s25, %s963_s18 }
  0x43   : > { %p967_p9 = pneg %p966_p7  ;;  %p973_p12 = por %p972_p11, %p971_p13 }
  0x45   : > { %p974_p0 = pnand %p973_p12, %p967_p9 }
  0x47   : > { %977 = shalt.err (!%p974_p0)
}
  0x48   : > { %872 = dma.hbm_to_vmem [thread:$0]  (!%p1127_p4), %s1145_s7, 128, %s1140_s28, %s163_s0  }
  0x49   : > { %186 = sbr.rel (%p1136_p6) target bundleno = 291 (0x123), region = 32  ;;  %s188_s27 = sand.u32 (!%p1136_p6), 1, %s1014_s8  }
  0x4a   : > { %s1175_s29 = sshll.u32 (!%p1136_p6), %s188_s27, 3  ;;  %s189_s30 = scalar_lea.sflag (!%p1136_p6), [#allocation6], %s188_s27 }
  0x4b   : > { %s192_s6 = scalar_lea.vmem (!%p1136_p6), [#allocation5], %s1175_s29  ;;  %p1771_p8 = scmp.ne.s32.totalorder (!%p1136_p6), %s1767_s16, 0 }
  0x50   : > { %1005 = dma.done.wait (%p1771_p8), %s189_s30, 128  }
  0x51   : > { %1007 = vsyncadd (%p1771_p8), %s189_s30, 4294967168  ;;  %s1183_s21 = sshll.u32 %s1022_s9, 4  ;;  %v280_v0 = vlaneseq  ;;  %s1772_s4 = sld [smem:[#allocation14_spill]]  ;;  %v1234_v10 = vld [vmem:[%s192_s6] sm:$0xff]  ;;  %vm309_vm3 = vcmask 1043456   ;;  %v1035_v13 = vmov 0  }
  0x52   : > { %s231_s26 = sadd.s32 8, %s1183_s21  ;;  %s233_s28 = sadd.s32 12, %s1183_s21  ;;  %v1255_v20 = vcombine.high %v1234_v10, %v1234_v10 }
  0x53   : > { %s1187_s7 = sld [smem:[#allocation4 + %s231_s26]]  ;;  %v281_v1 = vshrl.u32 %v280_v0, 7  ;;  %v620_v2 = vand.u32 127, %v280_v0  ;;  %s468_s16 = sadd.s32 2, %s1183_s21 }
  0x54   : > { %s1189_s0 = sld [smem:[#allocation4 + %s233_s28]]  ;;  %s470_s13 = sadd.s32 6, %s1183_s21 }
  0x55   : > { %s1193_s14 = sld [smem:[#allocation4 + %s468_s16]]  ;;  %v1197_v3 = vsub.s32 %v620_v2, %v281_v1  ;;  %s272_s19 = sadd.s32 4, %s1183_s21  ;;  %v1220_v8 = vsub.s32 0, %v281_v1  ;;  %v1222_v9 = vsub.s32 1, %v281_v1 }
  0x56   : > { %s1195_s15 = sld [smem:[#allocation4 + %s470_s13]]  ;;  %s241_s18 = sadd.s32 9, %s1183_s21 }
  0x57   : > { %s1200_s17 = sld [smem:[#allocation4 + %s1183_s21]]  ;;  %v1209_v4 = vld [vmem:[%s1772_s4] sm:$0x3]  ;;  %s243_s26 = sadd.s32 13, %s1183_s21 }
  0x58   : > { %s1203_s20 = sld [smem:[#allocation4 + %s272_s19]]  ;;  %s251_s28 = sadd.s32 10, %s1183_s21 }
  0x59   : > { %s1211_s25 = sld [smem:[#allocation4 + %s241_s18]]  ;;  %v235_v6 = vstv %s1187_s7  ;;  %s253_s19 = sadd.s32 14, %s1183_s21 }
  0x5a   : > { %s1773_s3 = sld [smem:[#allocation13_spill]]  ;;  %v237_v7 = vstv %s1189_s0  ;;  %vm236_vm0 = vcmp.ge.s32.totalorder %v1209_v4, %v235_v6  ;;  %s261_s18 = sadd.s32 11, %s1183_s21 }
  0x5b   : > { %vm238_vm1 = vcmp.lt.s32.totalorder %v1209_v4, %v237_v7  ;;  %s1228_s16 = sld [smem:[#allocation4 + %s243_s26]]  ;;  %v472_v11 = vstv %s1193_s14  ;;  %s263_s29 = sadd.s32 15, %s1183_s21 }
  0x5c   : > { %s1230_s13 = sld [smem:[#allocation4 + %s251_s28]]  ;;  %vm239_vm2 = vmand %vm236_vm0, %vm238_vm1  ;;  %v474_v12 = vstv %s1195_s15  ;;  %s543_s27 = sadd.s32 3, %s1183_s21 }
  0x5d   : > { %v296_v14 = vsel %vm239_vm2, 1, %v1035_v13  ;;  %v274_v15 = vstv %s1200_s17  ;;  %s1260_s6 = sld [smem:[#allocation4 + %s253_s19]]  ;;  %s545_s30 = sadd.s32 7, %s1183_s21 }
  0x5e   : > { %v300_v16 = vrot.slane %v296_v14, %v1220_v8  ;;  %v304_v17 = vrot.slane %v296_v14, %v1222_v9  ;;  %v276_v19 = vstv %s1203_s20  ;;  %s1274_s22 = sld [smem:[#allocation4 + %s261_s18]]  ;;  %p240_p13 = scmp.gt.s32.totalorder %s1189_s0, %s1187_s7 }
  0x5f   : > { %v245_v22 = vstv %s1211_s25  ;;  %s1276_s24 = sld [smem:[#allocation4 + %s263_s29]]  ;;  %s393_s26 = sadd.s32 1, %s1183_s21 }
  0x60   : > { %v1216_v5 = vld [vmem:[%s1773_s3] sm:$0x3]  ;;  %vm1262_vm9 = vcmp.eq.s32.totalorder %v300_v16, 1  ;;  %vm1266_vm10 = vcmp.eq.s32.totalorder %v304_v17, 1  ;;  %vm1280_vm12 = vcmp.ge.s32.totalorder %v1209_v4, %v245_v22  ;;  %p490_p4 = scmp.gt.s32.totalorder %s1195_s15, %s1193_s14  ;;  %s1321_s28 = sld [smem:[#allocation4 + %s543_s27]] }
  0x61   : > { %vm473_vm4 = vcmp.ge.s32.totalorder %v1216_v5, %v472_v11  ;;  %vm475_vm5 = vcmp.lt.s32.totalorder %v1216_v5, %v474_v12  ;;  %vm1247_vm7 = vcmp.ge.s32.totalorder %v1216_v5, %v274_v15  ;;  %vm277_vm8 = vcmp.lt.s32.totalorder %v1216_v5, %v276_v19  ;;  %s1331_s19 = sld [smem:[#allocation4 + %s545_s30]]  ;;  %s395_s27 = sadd.s32 5, %s1183_s21 }
  0x62   : > { %vm476_vm6 = vmand %vm473_vm4, %vm475_vm5  ;;  %v247_v29 = vstv %s1228_s16  ;;  %v255_v30 = vstv %s1230_s13  ;;  %p1339_p6 = pnand %p490_p4, %p240_p13  ;;  %s1350_s29 = sld [smem:[#allocation4 + %s393_s26]] }
  0x63   : > { %v477_v21 = vsel %vm476_vm6, 1, %v1035_v13  ;;  %vm278_vm11 = vmand %vm1247_vm7, %vm277_vm8  ;;  %vm1299_vm15 = vcmp.lt.s32.totalorder %v1209_v4, %v247_v29  ;;  %vm1304_vm0 = vcmp.ge.s32.totalorder %v1209_v4, %v255_v30  ;;  %v257_v52 = vstv %s1260_s6  ;;  %s1417_s21 = sld [smem:[#allocation4 + %s395_s27]]  ;;  %p295_p10 = scmp.gt.s32.totalorder %s1203_s20, %s1200_s17 }
  0x64   : > { %v481_v25 = vrot.slane %v477_v21, %v1220_v8  ;;  %v485_v26 = vrot.slane %v477_v21, %v1222_v9  ;;  %v279_v27 = vsel %vm278_vm11, 1, %v1035_v13  ;;  %vm249_vm4 = vmand %vm1280_vm12, %vm1299_vm15  ;;  %v265_v53 = vstv %s1274_s22  ;;  %p1761_p2 = scmp.gt.s32.totalorder %s1228_s16, %s1211_s25  ;;  %p1760_p7 = scmp.gt.s32.totalorder %s1260_s6, %s1230_s13 }
  0x65   : > { %v283_v31 = vrot.slane %v279_v27, %v1220_v8  ;;  %v287_v32 = vrot.slane %v279_v27, %v1222_v9  ;;  %v321_v46 = vsel %vm249_vm4, 1, %v1035_v13  ;;  %v267_v54 = vstv %s1276_s24  ;;  %p1491_p1 = pnand %p295_p10, %p240_p13  ;;  %p1762_p12 = scmp.gt.s32.totalorder %s1276_s24, %s1274_s22 }
  0x66   : > { %vm486_vm13 = vcmp.eq.s32.totalorder %v481_v25, 1  ;;  %vm487_vm14 = vcmp.eq.s32.totalorder %v485_v26, 1  ;;  %v325_v49 = vrot.slane %v321_v46, %v1220_v8  ;;  %v329_v50 = vrot.slane %v321_v46, %v1222_v9  ;;  %p1516_p3 = pnand %p490_p4, %p1761_p2  ;;  %p1542_p5 = pnand %p295_p10, %p1761_p2 }
  0x67   : > { %v1293_v33 = vsel %vm486_vm13, %v1234_v10, -inf  ;;  %v1296_v34 = vsel %vm487_vm14, %v1255_v20, -inf  ;;  %vm288_vm1 = vcmp.eq.s32.totalorder %v283_v31, 1  ;;  %vm289_vm2 = vcmp.eq.s32.totalorder %v287_v32, 1  ;;  %p1565_p9 = pnand %p490_p4, %p1760_p7  ;;  %p1575_p11 = pnand %p295_p10, %p1760_p7 }
  0x68   : > { %v491_v37 = vsel %vm1262_vm9, %v1293_v33, -inf  ;;  %v492_v38 = vsel %vm1266_vm10, %v1296_v34, -inf  ;;  %v1326_v41 = vsel %vm288_vm1, %v1234_v10, -inf  ;;  %v1329_v42 = vsel %vm289_vm2, %v1255_v20, -inf  ;;  %s1809_s27 = scalar_select %p1542_p5, 1, 0 }
  0x69   : > { %v493_v39 = vsel %vm309_vm3, %v491_v37, -inf  ;;  %v494_v40 = vsel %vm309_vm3, %v492_v38, -inf  ;;  %v307_v44 = vsel %vm1262_vm9, %v1326_v41, -inf  ;;  %v308_v45 = vsel %vm1266_vm10, %v1329_v42, -inf  ;;  %s1810_s2 = scalar_select %p1565_p9, 1, 0 }
  0x6a   : > { %v495_v43 = vmax.f32 %v493_v39, %v494_v40  ;;  %v310_v47 = vsel %vm309_vm3, %v307_v44, -inf  ;;  %v311_v48 = vsel %vm309_vm3, %v308_v45, -inf  ;;  %vm1359_vm5 = vcmp.eq.s32.totalorder %v325_v49, 1  ;;  %s1811_s3 = scalar_select %p1575_p11, 1, 0 }
  0x6b   : > { %v312_v51 = vmax.f32 %v310_v47, %v311_v48  ;;  %vm1363_vm6 = vcmp.eq.s32.totalorder %v329_v50, 1  ;;  %vm1368_vm7 = vcmp.lt.s32.totalorder %v1209_v4, %v257_v52  ;;  %vm1373_vm8 = vcmp.ge.s32.totalorder %v1209_v4, %v265_v53  ;;  %p1599_p0 = pnand %p490_p4, %p1762_p12  ;;  %p1609_p8 = pnand %p295_p10, %p1762_p12 }
  0x6c   : > { %496 = vmax.xlane.f32.xlu1 %v495_v43  ;;  %v504_v59 = vsel %vm1359_vm5, %v1293_v33, -inf  ;;  %v505_v60 = vsel %vm1363_vm6, %v1296_v34, -inf  ;;  %v332_v61 = vsel %vm1359_vm5, %v1326_v41, -inf  ;;  %v333_v62 = vsel %vm1363_vm6, %v1329_v42, -inf  ;;  %vm259_vm11 = vmand %vm1304_vm0, %vm1368_vm7  ;;  %p565_p7 = scmp.gt.s32.totalorder %s1331_s19, %s1321_s28  ;;  %p415_p2 = scmp.gt.s32.totalorder %s1417_s21, %s1350_s29 }
  0x6d   : > { %313 = vmax.xlane.f32.xlu0 %v312_v51  ;;  %v506_v63 = vsel %vm309_vm3, %v504_v59, -inf  ;;  %v507_v0 = vsel %vm309_vm3, %v505_v60, -inf  ;;  %v334_v1 = vsel %vm309_vm3, %v332_v61, -inf  ;;  %v335_v2 = vsel %vm309_vm3, %v333_v62, -inf  ;;  %s1812_s4 = scalar_select %p1599_p0, 1, 0 }
  0x6e   : > { %v508_v6 = vmax.f32 %v506_v63, %v507_v0  ;;  %v336_v7 = vmax.f32 %v334_v1, %v335_v2  ;;  %v345_v11 = vsel %vm259_vm11, 1, %v1035_v13  ;;  %vm268_vm12 = vcmp.lt.s32.totalorder %v1209_v4, %v267_v54  ;;  %s1813_s12 = scalar_select %p1609_p8, 1, 0 }
  0x6f   : > { %v349_v12 = vrot.slane %v345_v11, %v1220_v8  ;;  %v353_v14 = vrot.slane %v345_v11, %v1222_v9  ;;  %vm269_vm13 = vmand %vm1373_vm8, %vm268_vm12  ;;  %v547_v15 = vstv %s1321_s28  ;;  %v549_v16 = vstv %s1331_s19  ;;  %p1620_p4 = pnand %p565_p7, %p240_p13  ;;  %p1627_p0 = pnand %p415_p2, %p240_p13 }
  0x70   : > { %509 = vmax.xlane.f32.xlu1 %v508_v6  ;;  %v369_v17 = vsel %vm269_vm13, 1, %v1035_v13  ;;  %vm1408_vm14 = vcmp.ge.s32.totalorder %v1216_v5, %v547_v15  ;;  %vm1413_vm15 = vcmp.lt.s32.totalorder %v1216_v5, %v549_v16  ;;  %v397_v19 = vstv %s1350_s29  ;;  %p1816_p10 = scmp.gt.s32.totalorder %s1228_s16, %s1211_s25  ;;  %p1820_p9 = scmp.gt.s32.totalorder %s1260_s6, %s1230_s13 }
  0x71   : > { %337 = vmax.xlane.f32.xlu0 %v336_v7  ;;  %vm1420_vm0 = vcmp.eq.s32.totalorder %v349_v12, 1  ;;  %vm1424_vm1 = vcmp.eq.s32.totalorder %v353_v14, 1  ;;  %v373_v25 = vrot.slane %v369_v17, %v1220_v8  ;;  %v377_v26 = vrot.slane %v369_v17, %v1222_v9  ;;  %vm551_vm7 = vmand %vm1408_vm14, %vm1413_vm15  ;;  %s1814_s14 = scalar_select %p1620_p4, 1, 0 }
  0x72   : > { %v517_v27 = vsel %vm1420_vm0, %v1293_v33, -inf  ;;  %v518_v28 = vsel %vm1424_vm1, %v1296_v34, -inf  ;;  %v356_v29 = vsel %vm1420_vm0, %v1326_v41, -inf  ;;  %v357_v30 = vsel %vm1424_vm1, %v1329_v42, -inf  ;;  %s1815_s15 = scalar_select %p1627_p0, 1, 0 }
  0x73   : > { %v519_v31 = vsel %vm309_vm3, %v517_v27, -inf  ;;  %v520_v32 = vsel %vm309_vm3, %v518_v28, -inf  ;;  %v358_v35 = vsel %vm309_vm3, %v356_v29, -inf  ;;  %v359_v36 = vsel %vm309_vm3, %v357_v30, -inf  ;;  %p1634_p12 = pnand %p565_p7, %p1816_p10  ;;  %p1818_p8 = pmov %p1816_p10 }
  0x74   : > { %v521_v37 = vmax.f32 %v519_v31, %v520_v32  ;;  %v360_v38 = vmax.f32 %v358_v35, %v359_v36  ;;  %vm1446_vm2 = vcmp.eq.s32.totalorder %v373_v25, 1  ;;  %vm1450_vm4 = vcmp.eq.s32.totalorder %v377_v26, 1  ;;  %p1648_p5 = pnand %p565_p7, %p1820_p9  ;;  %p1822_p13 = pmov %p1820_p9 }
  0x75   : > { %v530_v43 = vsel %vm1446_vm2, %v1293_v33, -inf  ;;  %v531_v44 = vsel %vm1450_vm4, %v1296_v34, -inf  ;;  %v380_v45 = vsel %vm1446_vm2, %v1326_v41, -inf  ;;  %v381_v46 = vsel %vm1450_vm4, %v1329_v42, -inf  ;;  %s1817_s17 = scalar_select %p1634_p12, 1, 0 }
  0x76   : > { %522 = vmax.xlane.f32.xlu1 %v521_v37  ;;  %361 = vmax.xlane.f32.xlu0 %v360_v38  ;;  %v532_v47 = vsel %vm309_vm3, %v530_v43, -inf  ;;  %v533_v33 = vsel %vm309_vm3, %v531_v44, -inf  ;;  %v382_v48 = vsel %vm309_vm3, %v380_v45, -inf  ;;  %v383_v34 = vsel %vm309_vm3, %v381_v46, -inf  ;;  %p1641_p11 = pnand %p415_p2, %p1818_p8  ;;  %p1655_p4 = pnand %p415_p2, %p1822_p13 }
  0x77   : > { %v534_v49 = vmax.f32 %v532_v47, %v533_v33  ;;  %v384_v50 = vmax.f32 %v382_v48, %v383_v34  ;;  %v552_v41 = vsel %vm551_vm7, 1, %v1035_v13  ;;  %vm398_vm8 = vcmp.ge.s32.totalorder %v1216_v5, %v397_v19  ;;  %p1824_p0 = scmp.gt.s32.totalorder %s1276_s24, %s1274_s22  ;;  %p1828_p9 = scmp.ne.s32.totalorder %s1809_s27, 0 }
  0x78   : > { %v556_v42 = vrot.slane %v552_v41, %v1220_v8  ;;  %v560_v51 = vrot.slane %v552_v41, %v1222_v9  ;;  %v399_v52 = vstv %s1417_s21  ;;  %s851_s16 = scalar_select %p1339_p6, 0, 1 }
  0x79   : > { %vm400_vm11 = vcmp.lt.s32.totalorder %v1216_v5, %v399_v52  ;;  %p1662_p10 = pnand %p565_p7, %p1824_p0  ;;  %p1826_p12 = pmov %p1824_p0 }
  0x7a   : > { %535 = vmax.xlane.f32.xlu1 %v534_v49  ;;  %385 = vmax.xlane.f32.xlu0 %v384_v50  ;;  %vm561_vm12 = vcmp.eq.s32.totalorder %v556_v42, 1  ;;  %vm562_vm13 = vcmp.eq.s32.totalorder %v560_v51, 1  ;;  %vm401_vm14 = vmand %vm398_vm8, %vm400_vm11  ;;  %s843_s13 = scalar_select %p1491_p1, 0, 1  ;;  %v501_v39 = vstv %s851_s16 }
  0x7b   : > { %v563_v53 = vsel %vm561_vm12, %v1234_v10, -inf  ;;  %v564_v54 = vsel %vm562_vm13, %v1255_v20, -inf  ;;  %v402_v57 = vsel %vm401_vm14, 1, %v1035_v13  ;;  %p1669_p8 = pnand %p415_p2, %p1826_p12  ;;  %p1829_p6 = scmp.ne.s32.totalorder %s1810_s2, 0  ;;  %vm720_vm12 = vcmask 1042432  }
  0x7c   : > { %v566_v5 = vsel %vm1262_vm9, %v563_v53, -inf  ;;  %v567_v58 = vsel %vm1266_vm10, %v564_v54, -inf  ;;  %v406_v59 = vrot.slane %v402_v57, %v1220_v8  ;;  %v410_v60 = vrot.slane %v402_v57, %v1222_v9  ;;  %s852_s6 = scalar_select %p1516_p3, 0, 1 }
  0x7d   : > { %v568_v61 = vsel %vm309_vm3, %v566_v5, -inf  ;;  %v569_v13 = vsel %vm309_vm3, %v567_v58, -inf  ;;  %v579_v62 = vsel %vm1359_vm5, %v563_v53, -inf  ;;  %v580_v63 = vsel %vm1363_vm6, %v564_v54, -inf  ;;  %s844_s19 = scalar_select %p1828_p9, 0, 1 }
  0x7e   : > { %v570_v0 = vmax.f32 %v568_v61, %v569_v13  ;;  %vm411_vm15 = vcmp.eq.s32.totalorder %v406_v59, 1  ;;  %vm412_vm7 = vcmp.eq.s32.totalorder %v410_v60, 1  ;;  %v581_v8 = vsel %vm309_vm3, %v579_v62, -inf  ;;  %s853_s22 = scalar_select %p1829_p6, 0, 1 }
  0x7f   : > { %v413_v9 = vsel %vm411_vm15, %v1234_v10, -inf  ;;  %v414_v1 = vsel %vm412_vm7, %v1255_v20, -inf  ;;  %v582_v2 = vsel %vm309_vm3, %v580_v63, -inf  ;;  %v592_v6 = vsel %vm1420_vm0, %v563_v53, -inf  ;;  %p1830_p1 = scmp.ne.s32.totalorder %s1811_s3, 0  ;;  %p1831_p2 = scmp.ne.s32.totalorder %s1812_s4, 0 }
  0x80   : > { %571 = vmax.xlane.f32.xlu1 %v570_v0  ;;  %v416_v7 = vsel %vm1262_vm9, %v413_v9, -inf  ;;  %v417_v11 = vsel %vm1266_vm10, %v414_v1, -inf  ;;  %v583_v12 = vmax.f32 %v581_v8, %v582_v2  ;;  %v429_v14 = vsel %vm1359_vm5, %v413_v9, -inf  ;;  %p1832_p3 = scmp.ne.s32.totalorder %s1813_s12, 0  ;;  %p1833_p7 = scmp.ne.s32.totalorder %s1814_s14, 0 }
  0x81   : > { %v418_v10 = vsel %vm309_vm3, %v416_v7, -inf  ;;  %v419_v20 = vsel %vm309_vm3, %v417_v11, -inf  ;;  %v430_v15 = vsel %vm1363_vm6, %v414_v1, -inf  ;;  %v431_v23 = vsel %vm309_vm3, %v429_v14, -inf  ;;  %s845_s24 = scalar_select %p1830_p1, 0, 1 }
  0x82   : > { %v420_v24 = vmax.f32 %v418_v10, %v419_v20  ;;  %v432_v55 = vsel %vm309_vm3, %v430_v15, -inf  ;;  %v593_v56 = vsel %vm1424_vm1, %v564_v54, -inf  ;;  %v594_v16 = vsel %vm309_vm3, %v592_v6, -inf  ;;  %s854_s18 = scalar_select %p1831_p2, 0, 1 }
  0x83   : > { %v595_v17 = vsel %vm309_vm3, %v593_v56, -inf  ;;  %v442_v18 = vsel %vm1420_vm0, %v413_v9, -inf  ;;  %v443_v4 = vsel %vm1424_vm1, %v414_v1, -inf  ;;  %v433_v19 = vmax.f32 %v431_v23, %v432_v55  ;;  %s846_s2 = scalar_select %p1832_p3, 0, 1 }
  0x84   : > { %421 = vmax.xlane.f32.xlu0 %v420_v24  ;;  %584 = vmax.xlane.f32.xlu1 %v583_v12  ;;  %v596_v25 = vmax.f32 %v594_v16, %v595_v17  ;;  %v605_v26 = vsel %vm1446_vm2, %v563_v53, -inf  ;;  %v444_v21 = vsel %vm309_vm3, %v442_v18, -inf  ;;  %v445_v22 = vsel %vm309_vm3, %v443_v4, -inf  ;;  %s855_s3 = scalar_select %p1833_p7, 0, 1 }
  0x85   : > { %v606_v27 = vsel %vm1450_vm4, %v564_v54, -inf  ;;  %v607_v28 = vsel %vm309_vm3, %v605_v26, -inf  ;;  %v455_v30 = vsel %vm1446_vm2, %v413_v9, -inf  ;;  %v456_v31 = vsel %vm1450_vm4, %v414_v1, -inf  ;;  %p1834_p12 = scmp.ne.s32.totalorder %s1815_s15, 0  ;;  %p1835_p0 = scmp.ne.s32.totalorder %s1817_s17, 0 }
  0x86   : > { %v608_v29 = vsel %vm309_vm3, %v606_v27, -inf  ;;  %v446_v32 = vmax.f32 %v444_v21, %v445_v22  ;;  %v457_v36 = vsel %vm309_vm3, %v455_v30, -inf  ;;  %v458_v37 = vsel %vm309_vm3, %v456_v31, -inf  ;;  %s848_s29 = scalar_select %p1641_p11, 0, 1 }
  0x87   : > { %v609_v35 = vmax.f32 %v607_v28, %v608_v29  ;;  %v459_v38 = vmax.f32 %v457_v36, %v458_v37  ;;  %v318_v40 = vstv %s843_s13  ;;  %vm502_vm9 = vcmp.eq.s32.totalorder %v501_v39, 1  ;;  %s847_s4 = scalar_select %p1834_p12, 0, 1 }
  0x88   : > { %434 = vmax.xlane.f32.xlu0 %v433_v19  ;;  %597 = vmax.xlane.f32.xlu1 %v596_v25  ;;  %vm319_vm10 = vcmp.eq.s32.totalorder %v318_v40, 1  ;;  %v514_v45 = vstv %s852_s6  ;;  %v342_v46 = vstv %s844_s19  ;;  %vm716_vm0 = vcmask 1040384   ;;  %s856_s12 = scalar_select %p1835_p0, 0, 1 }
  0x89   : > { %vm515_vm5 = vcmp.eq.s32.totalorder %v514_v45, 1  ;;  %vm343_vm6 = vcmp.eq.s32.totalorder %v342_v46, 1  ;;  %v527_v51 = vstv %s853_s22  ;;  %v366_v52 = vstv %s845_s24  ;;  %s857_s21 = scalar_select %p1648_p5, 0, 1 }
  0x8a   : > { %vm528_vm1 = vcmp.eq.s32.totalorder %v527_v51, 1  ;;  %vm367_vm2 = vcmp.eq.s32.totalorder %v366_v52, 1  ;;  %v540_v58 = vstv %s854_s18  ;;  %v390_v59 = vstv %s846_s2  ;;  %s849_s30 = scalar_select %p1655_p4, 0, 1 }
  0x8b   : > { %vm718_vm4 = vcmask 1041408   ;;  %vm541_vm8 = vcmp.eq.s32.totalorder %v540_v58, 1  ;;  %vm391_vm11 = vcmp.eq.s32.totalorder %v390_v59, 1  ;;  %v576_v11 = vstv %s855_s3  ;;  %p219_p13 = scmp.lt.s32.totalorder %s1022_s9, 7 }
  0x8c   : > { %447 = vmax.xlane.f32.xlu0 %v446_v32  ;;  %610 = vmax.xlane.f32.xlu1 %v609_v35  ;;  %vm577_vm13 = vcmp.eq.s32.totalorder %v576_v11, 1  ;;  %v426_v15 = vstv %s847_s4  ;;  %v589_v23 = vstv %s856_s12  ;;  %v439_v16 = vstv %s848_s29  ;;  %s858_s26 = scalar_select %p1662_p10, 0, 1 }
  0x8d   : > { %vm427_vm14 = vcmp.eq.s32.totalorder %v426_v15, 1  ;;  %vm590_vm15 = vcmp.eq.s32.totalorder %v589_v23, 1  ;;  %v602_v17 = vstv %s857_s21  ;;  %vm723_vm7 = vcmask 1044480   ;;  %s1849_s9 = smov (!%p219_p13, %s1022_s9), 7 }
  0x8e   : > { %v452_v27 = vstv %s849_s30  ;;  %v615_v28 = vstv %s858_s26  ;;  %s850_s27 = scalar_select %p1669_p8, 0, 1 }
  0x8f   : > { %s862_s14 = sshll.u32 %s1849_s9, 4 }
  0x90   : > { %460 = vmax.xlane.f32.xlu0 %v459_v38  ;;  %v465_v39 = vstv %s850_s27  ;;  %s226_s20 = scalar_lea.vmem %s1756_s5, %s862_s14 }
  0xf9   : > { %v497_v43 = vpop.xlane.xlu1 %496 }
  0xfa   : > { %v503_v44 = vsel %vm502_vm9, %v497_v43, 0.0  ;;  %v314_v33 = vpop.xlane.xlu0 %313  ;;  %vm440_vm9 = vcmp.eq.s32.totalorder %v439_v16, 1 }
  0xfb   : > { %v672_v47 = vrot.slane %v503_v44, %v1197_v3  ;;  %v320_v48 = vsel %vm319_vm10, %v314_v33, 0.0  ;;  %vm603_vm10 = vcmp.eq.s32.totalorder %v602_v17, 1 }
  0xfc   : > { %v624_v34 = vrot.slane %v320_v48, %v1197_v3 }
  0xfd   : > { %v510_v49 = vpop.xlane.xlu1 %509 }
  0xfe   : > { %v338_v50 = vpop.xlane.xlu0 %337  ;;  %v516_v41 = vsel %vm515_vm5, %v510_v49, 0.0  ;;  %vm725_vm5 = vcmask 1045504  }
  0xff   : > { %v344_v42 = vsel %vm343_vm6, %v338_v50, 0.0  ;;  %v678_v53 = vrot.slane %v516_v41, %v1197_v3  ;;  %vm453_vm6 = vcmp.eq.s32.totalorder %v452_v27, 1 }
 0x100   : > { %v630_v54 = vrot.slane %v344_v42, %v1197_v3 }
 0x101   : > { %v729_v57 = vsel %vm716_vm0, %v672_v47, %v678_v53 }
 0x102   : > { %v717_v5 = vsel %vm716_vm0, %v624_v34, %v630_v54  ;;  %vm616_vm0 = vcmp.eq.s32.totalorder %v615_v28, 1 }
 0x103   : > { %v523_v60 = vpop.xlane.xlu1 %522  ;;  %v362_v61 = vpop.xlane.xlu0 %361 }
 0x104   : > { %v529_v13 = vsel %vm528_vm1, %v523_v60, 0.0  ;;  %v368_v62 = vsel %vm367_vm2, %v362_v61, 0.0  ;;  %vm736_vm1 = vcmask 31744   ;;  %vm466_vm2 = vcmp.eq.s32.totalorder %v465_v39, 1 }
 0x105   : > { %v684_v63 = vrot.slane %v529_v13, %v1197_v3  ;;  %v636_v0 = vrot.slane %v368_v62, %v1197_v3 }
 0x107   : > { %v730_v8 = vsel %vm718_vm4, %v729_v57, %v684_v63  ;;  %v719_v9 = vsel %vm718_vm4, %v717_v5, %v636_v0  ;;  %v536_v1 = vpop.xlane.xlu1 %535  ;;  %v386_v2 = vpop.xlane.xlu0 %385 }
 0x108   : > { %v542_v6 = vsel %vm541_vm8, %v536_v1, 0.0  ;;  %v392_v7 = vsel %vm391_vm11, %v386_v2, 0.0 }
 0x109   : > { %v690_v12 = vrot.slane %v542_v6, %v1197_v3  ;;  %v642_v14 = vrot.slane %v392_v7, %v1197_v3 }
 0x10b   : > { %v731_v10 = vsel %vm720_vm12, %v730_v8, %v690_v12  ;;  %v721_v20 = vsel %vm720_vm12, %v719_v9, %v642_v14 }
 0x10d   : > { %v572_v24 = vpop.xlane.xlu1 %571 }
 0x10e   : > { %v578_v55 = vsel %vm577_vm13, %v572_v24, 0.0 }
 0x10f   : > { %v696_v56 = vrot.slane %v578_v55, %v1197_v3 }
 0x111   : > { %v732_v18 = vsel %vm309_vm3, %v731_v10, %v696_v56  ;;  %v422_v4 = vpop.xlane.xlu0 %421  ;;  %v585_v19 = vpop.xlane.xlu1 %584 }
 0x112   : > { %v428_v25 = vsel %vm427_vm14, %v422_v4, 0.0  ;;  %v591_v26 = vsel %vm590_vm15, %v585_v19, 0.0 }
 0x113   : > { %v648_v21 = vrot.slane %v428_v25, %v1197_v3  ;;  %v702_v22 = vrot.slane %v591_v26, %v1197_v3 }
 0x115   : > { %v722_v29 = vsel %vm309_vm3, %v721_v20, %v648_v21  ;;  %v733_v30 = vsel %vm723_vm7, %v732_v18, %v702_v22  ;;  %v435_v31 = vpop.xlane.xlu0 %434  ;;  %v598_v32 = vpop.xlane.xlu1 %597  ;;  %vm727_vm3 = vcmask 1046528  }
 0x116   : > { %v441_v35 = vsel %vm440_vm9, %v435_v31, 0.0  ;;  %v604_v36 = vsel %vm603_vm10, %v598_v32, 0.0 }
 0x117   : > { %v654_v37 = vrot.slane %v441_v35, %v1197_v3  ;;  %v708_v38 = vrot.slane %v604_v36, %v1197_v3 }
 0x119   : > { %v724_v40 = vsel %vm723_vm7, %v722_v29, %v654_v37  ;;  %v734_v43 = vsel %vm725_vm5, %v733_v30, %v708_v38  ;;  %v448_v44 = vpop.xlane.xlu0 %447  ;;  %v611_v45 = vpop.xlane.xlu1 %610 }
 0x11a   : > { %v454_v46 = vsel %vm453_vm6, %v448_v44, 0.0  ;;  %v617_v47 = vsel %vm616_vm0, %v611_v45, 0.0 }
 0x11b   : > { %v660_v33 = vrot.slane %v454_v46, %v1197_v3  ;;  %v714_v48 = vrot.slane %v617_v47, %v1197_v3 }
 0x11d   : > { %v726_v34 = vsel %vm725_vm5, %v724_v40, %v660_v33  ;;  %v735_v49 = vsel %vm727_vm3, %v734_v43, %v714_v48  ;;  %v461_v50 = vpop.xlane.xlu0 %460 }
 0x11e   : > { %738 = vst.msk [vmem:[%s226_s20 + $0x8] sm:$0xff] %vm736_vm1, %v735_v49  ;;  %v467_v41 = vsel %vm466_vm2, %v461_v50, 0.0 }
 0x11f   : > { %v666_v42 = vrot.slane %v467_v41, %v1197_v3 }
 0x121   : > { %v728_v51 = vsel %vm727_vm3, %v726_v34, %v666_v42 }
 0x122   : > { %737 = vst.msk [vmem:[%s226_s20] sm:$0xff] %vm736_vm1, %v728_v51 }
 0x123 PF: > { %s26_s11 = sadd.s32 1, %s1030_s11   ;;  %s1836_s28 = sld [smem:[#allocation11_spill]] }
 0x124   : > { %p23_p5 = scmp.ge.s32.totalorder %s26_s11, 10   ;;  %s1837_s0 = smov %s1014_s8 }
 0x125   : > { %s1838_s8 = smov %s1018_s1  ;;  %s1839_s1 = smov %s1132_s23 }
 0x126   : > { %s1840_s9 = smov %s1026_s10  ;;  %25 = sbr.rel (!%p23_p5) target bundleno = 27 (0x1b), region = 72 }
 0x129   : > { %s1841_s10 = smov %s1836_s28 }
 0x12d   :  { %766 = vsyncpa [#allocation6], 1 }
 0x12e   :  { %768 = vsyncpa [#allocation6 + $0x1], 1 }

</bundles_post_ra>
